<compile_context>
chip_gen: v7x
topology: tpu7x:2x2x1
jax: 0.10.0
libtpu: 0.0.40
codegen_flags: <defaults>
</compile_context>

<pallas_src>
import math

import jax
import jax.numpy as jnp
from jax.experimental import pallas as pl
from jax.experimental.pallas import tpu as pltpu

ACTION_DIM = 2
STATE_DIM = 256 * 3  # 768
_DIMS = [STATE_DIM, 256, 128, 64, 32, ACTION_DIM]
_FLOPS_PER_ROW = 2 * sum(_DIMS[i] * _DIMS[i + 1] for i in range(len(_DIMS) - 1))


def _mlp_softmax_kernel(x_ref,
                        w1_ref, b1_ref,
                        w2_ref, b2_ref,
                        w3_ref, b3_ref,
                        w4_ref, b4_ref,
                        w5_ref, b5_ref,
                        out_ref):
    # bf16 operands on the MXU; f32 accumulate + bias + ReLU on the VPU.
    # The cast is a no-op when the producer already feeds bf16 (recommended).
    h = x_ref[...].astype(jnp.bfloat16)

    h = jnp.dot(h, w1_ref[...], preferred_element_type=jnp.float32) + b1_ref[...]
    h = jnp.maximum(h, 0.0).astype(jnp.bfloat16)

    h = jnp.dot(h, w2_ref[...], preferred_element_type=jnp.float32) + b2_ref[...]
    h = jnp.maximum(h, 0.0).astype(jnp.bfloat16)

    h = jnp.dot(h, w3_ref[...], preferred_element_type=jnp.float32) + b3_ref[...]
    h = jnp.maximum(h, 0.0).astype(jnp.bfloat16)

    h = jnp.dot(h, w4_ref[...], preferred_element_type=jnp.float32) + b4_ref[...]
    h = jnp.maximum(h, 0.0).astype(jnp.bfloat16)

    # Final 32 -> 2 projection.
    logits = jnp.dot(h, w5_ref[...], preferred_element_type=jnp.float32) + b5_ref[...]

    # Softmax over a 2-wide axis == sigmoid of the logit difference; exp and the
    # approximate reciprocal both run on the EUP (free bundle slots).
    # p0 + p1 == 1 exactly by construction.
    d = logits[:, 1:2] - logits[:, 0:1]
    p1 = pl.reciprocal(1.0 + jnp.exp(-d), approx=True)

    # Single packed output block: probs in cols 0:2, logits in cols 2:4.
    out_ref[...] = jnp.concatenate([1.0 - p1, p1, logits], axis=-1)


def init_params(key):
    """Deterministic synthetic parameters matching the module's layer shapes.

    Weights are stored bf16 (kernel feeds the MXU bf16 operands); biases f32.
    """
    params = []
    for i in range(len(_DIMS) - 1):
        key, kw, kb = jax.random.split(key, 3)
        fan_in = _DIMS[i]
        # PyTorch default Linear init range ~ U(-1/sqrt(fan_in), 1/sqrt(fan_in))
        bound = 1.0 / float(fan_in) ** 0.5
        w = jax.random.uniform(kw, (_DIMS[i], _DIMS[i + 1]), jnp.float32, -bound, bound)
        b = jax.random.uniform(kb, (1, _DIMS[i + 1]), jnp.float32, -bound, bound)
        params.append((w.astype(jnp.bfloat16), b))
    return params


def _round_up(n, m):
    return (n + m - 1) // m * m


def _choose_tile(B):
    """Pick (tm, Bp): tile rows and padded batch.

    * tm is a multiple of 16 sublanes (bf16 vreg packing).
    * Tiles are capped at 1024 rows (amortizes ~0.35 us/step grid overhead
      while staying far from VMEM limits on all generations).
    * For B > 256 the grid always has an even number (>= 2) of steps so both
      v7x TensorCores get work, and tm is sized to minimize dead padded rows
      in the final step (e.g. B=300 -> tm=160, Bp=320, not Bp=512).
    """
    Bp_min = _round_up(max(B, 1), 16)
    if Bp_min <= 256:
        return Bp_min, Bp_min
    n_tiles = max(2, math.ceil(Bp_min / 1024))
    if n_tiles % 2:
        n_tiles += 1
    tm = _round_up(math.ceil(B / n_tiles), 16)
    Bp = _round_up(B, tm)
    return tm, Bp


def _forward_impl(x, params):
    """Runs the fused MLP+softmax kernel. Returns (probs, logits), each (B, 2)."""
    B = x.shape[0]
    tm, Bp = _choose_tile(B)
    if Bp != B:
        x = jnp.pad(x, ((0, Bp - B), (0, 0)))
    n_tiles = Bp // tm

    flat = [x]
    for (w, b) in params:
        flat.append(w)
        flat.append(b)

    # Streaming input: tiled over the batch grid; triple-buffer it when the
    # grid is deep enough for that to matter (weights/biases stay default).
    x_spec = pl.BlockSpec((tm, STATE_DIM), lambda i: (i, 0))
    if n_tiles >= 3:
        try:
            x_spec = pl.BlockSpec((tm, STATE_DIM), lambda i: (i, 0),
                                  pipeline_mode=pl.Buffered(3))
        except TypeError:
            pass  # older API without pipeline_mode: fall back to double buffering

    in_specs = [x_spec]
    for arr in flat[1:]:
        # Constant block index => parameter is fetched once and kept VMEM-resident.
        in_specs.append(pl.BlockSpec(arr.shape, lambda i: (0, 0)))

    out_shape = jax.ShapeDtypeStruct((Bp, 2 * ACTION_DIM), jnp.float32)
    out_specs = pl.BlockSpec((tm, 2 * ACTION_DIM), lambda i: (i, 0))

    param_bytes = sum(w.size * w.dtype.itemsize + b.size * b.dtype.itemsize
                      for (w, b) in params)
    cost = pl.CostEstimate(
        flops=_FLOPS_PER_ROW * Bp,
        transcendentals=2 * Bp,  # one exp + one reciprocal per row
        bytes_accessed=Bp * (STATE_DIM * x.dtype.itemsize + 2 * ACTION_DIM * 4)
                       + param_bytes,
    )

    cp_kwargs = dict(dimension_semantics=("parallel",))  # v7x: shard tiles over 2 TCs
    if tm >= 512:
        # v5e's default scoped VMEM is 16 MiB; leave headroom for the buffered
        # x tiles + lane-padded output buffers + resident weights.
        cp_kwargs["vmem_limit_bytes"] = 48 * 1024 * 1024

    out = pl.pallas_call(
        _mlp_softmax_kernel,
        out_shape=out_shape,
        grid=(n_tiles,),
        in_specs=in_specs,
        out_specs=out_specs,
        compiler_params=pltpu.CompilerParams(**cp_kwargs),
        cost_estimate=cost,
    )(*flat)

    probs = out[:B, :ACTION_DIM]
    logits = out[:B, ACTION_DIM:]
    return probs, logits


def segmentation_policy_forward(x, params):
    """Returns action_probs of shape (B, ACTION_DIM) — the get_action=False path."""
    probs, _ = _forward_impl(x, params)
    return probs


def segmentation_policy_forward_with_actions(x, params, key):
    """Mirrors get_action=True: sample an action per row from action_probs.

    The PyTorch module uses np.random.choice (host-side, nondeterministic);
    here we sample with jax.random.categorical on the kernel's logits (no
    log(probs) round-trip, no -inf from underflowed probabilities).
    """
    probs, logits = _forward_impl(x, params)
    actions = jax.random.categorical(key, logits, axis=-1)
    return actions, probs


def _reference_forward(x, params):
    """Pure-JAX reference matching the kernel's bf16-operand / f32-accumulate math."""
    h = x.astype(jnp.bfloat16).astype(jnp.float32)
    n = len(params)
    for idx, (w, b) in enumerate(params):
        h = jnp.dot(h, w.astype(jnp.float32)) + b
        if idx < n - 1:
            h = jnp.maximum(h, 0.0)
            h = h.astype(jnp.bfloat16).astype(jnp.float32)
    return jax.nn.softmax(h, axis=1), h


if __name__ == "__main__":
    key = jax.random.PRNGKey(0)
    kp, kx, ka = jax.random.split(key, 3)

    params = init_params(kp)

    # Producer emits x directly in bf16 (no standalone wrapper-side cast needed).
    B = 8
    x = jax.random.normal(kx, (B, STATE_DIM), dtype=jnp.bfloat16)

    probs = segmentation_policy_forward(x, params)
    probs = jax.block_until_ready(probs)

    actions, probs2 = segmentation_policy_forward_with_actions(x, params, ka)
    actions = jax.block_until_ready(actions)

    # Correctness check against a pure-JAX reference using the same bf16 weights.
    ref_probs, _ = _reference_forward(x, params)
    assert probs.shape == (B, ACTION_DIM)
    assert jnp.allclose(probs, ref_probs, atol=2e-3, rtol=2e-3), "mismatch vs reference"
    assert jnp.allclose(jnp.sum(probs, axis=1), 1.0, atol=1e-5)
    assert actions.shape == (B,)
    assert bool(jnp.all((actions >= 0) & (actions < ACTION_DIM)))

    # TODO(synk): np.random.choice sampling in the original forward is host-side
    # and nondeterministic; replaced with jax.random.categorical outside the kernel.
    print("KERNEL_OK")
</pallas_src>

<mosaic_0001>
module attributes {stable_mosaic.version = 11 : i64} {
  func.func @_mlp_softmax_kernel(%arg0: i32, %arg1: memref<16x768xbf16, #tpu.memory_space<vmem>>, %arg2: memref<768x256xbf16, #tpu.memory_space<vmem>>, %arg3: memref<1x256xf32, #tpu.memory_space<vmem>>, %arg4: memref<256x128xbf16, #tpu.memory_space<vmem>>, %arg5: memref<1x128xf32, #tpu.memory_space<vmem>>, %arg6: memref<128x64xbf16, #tpu.memory_space<vmem>>, %arg7: memref<1x64xf32, #tpu.memory_space<vmem>>, %arg8: memref<64x32xbf16, #tpu.memory_space<vmem>>, %arg9: memref<1x32xf32, #tpu.memory_space<vmem>>, %arg10: memref<32x2xbf16, #tpu.memory_space<vmem>>, %arg11: memref<1x2xf32, #tpu.memory_space<vmem>>, %arg12: memref<16x4xf32, #tpu.memory_space<vmem>>) attributes {dimension_semantics = [#tpu.dimension_semantics<parallel>], iteration_bounds = array<i64: 1>, scalar_prefetch = 0 : i64, scratch_operands = 0 : i64, tpu.core_type = #tpu.core_type<tc>, window_params = [{transform_indices = @transform_0, window_bounds = array<i64: 16, 768>}, {pipeline_mode = #tpu.pipeline_mode<synchronous>, transform_indices = @transform_1, window_bounds = array<i64: 768, 256>}, {pipeline_mode = #tpu.pipeline_mode<synchronous>, transform_indices = @transform_2, window_bounds = array<i64: 1, 256>}, {pipeline_mode = #tpu.pipeline_mode<synchronous>, transform_indices = @transform_3, window_bounds = array<i64: 256, 128>}, {pipeline_mode = #tpu.pipeline_mode<synchronous>, transform_indices = @transform_4, window_bounds = array<i64: 1, 128>}, {pipeline_mode = #tpu.pipeline_mode<synchronous>, transform_indices = @transform_5, window_bounds = array<i64: 128, 64>}, {pipeline_mode = #tpu.pipeline_mode<synchronous>, transform_indices = @transform_6, window_bounds = array<i64: 1, 64>}, {pipeline_mode = #tpu.pipeline_mode<synchronous>, transform_indices = @transform_7, window_bounds = array<i64: 64, 32>}, {pipeline_mode = #tpu.pipeline_mode<synchronous>, transform_indices = @transform_8, window_bounds = array<i64: 1, 32>}, {pipeline_mode = #tpu.pipeline_mode<synchronous>, transform_indices = @transform_9, window_bounds = array<i64: 32, 2>}, {pipeline_mode = #tpu.pipeline_mode<synchronous>, transform_indices = @transform_10, window_bounds = array<i64: 1, 2>}, {transform_indices = @transform_11, window_bounds = array<i64: 16, 4>}]} {
    %c0 = arith.constant 0 : index
    %c0_0 = arith.constant 0 : index
    %0 = vector.load %arg1[%c0, %c0_0] : memref<16x768xbf16, #tpu.memory_space<vmem>>, vector<16x768xbf16>
    %c0_1 = arith.constant 0 : index
    %c0_2 = arith.constant 0 : index
    %1 = vector.load %arg2[%c0_1, %c0_2] : memref<768x256xbf16, #tpu.memory_space<vmem>>, vector<768x256xbf16>
    %cst = arith.constant dense<0.000000e+00> : vector<16x256xf32>
    %2 = tpu.matmul %0, %1, %cst {dimension_numbers = #tpu.dot_dimension_numbers<[1], [0], [0], [1], [0, 0, 1, 1], [], []>} : vector<16x768xbf16>, vector<768x256xbf16>, vector<16x256xf32> -> vector<16x256xf32>
    %c0_3 = arith.constant 0 : index
    %c0_4 = arith.constant 0 : index
    %3 = vector.load %arg3[%c0_3, %c0_4] : memref<1x256xf32, #tpu.memory_space<vmem>>, vector<1x256xf32>
    %4 = vector.broadcast %3 : vector<1x256xf32> to vector<16x256xf32>
    %5 = arith.addf %2, %4 : vector<16x256xf32>
    %cst_5 = arith.constant 0.000000e+00 : f32
    %6 = vector.broadcast %cst_5 : f32 to vector<16x256xf32>
    %7 = arith.maximumf %5, %6 : vector<16x256xf32>
    %8 = arith.truncf %7 : vector<16x256xf32> to vector<16x256xbf16>
    %c0_6 = arith.constant 0 : index
    %c0_7 = arith.constant 0 : index
    %9 = vector.load %arg4[%c0_6, %c0_7] : memref<256x128xbf16, #tpu.memory_space<vmem>>, vector<256x128xbf16>
    %cst_8 = arith.constant dense<0.000000e+00> : vector<16x128xf32>
    %10 = tpu.matmul %8, %9, %cst_8 {dimension_numbers = #tpu.dot_dimension_numbers<[1], [0], [0], [1], [0, 0, 1, 1], [], []>} : vector<16x256xbf16>, vector<256x128xbf16>, vector<16x128xf32> -> vector<16x128xf32>
    %c0_9 = arith.constant 0 : index
    %c0_10 = arith.constant 0 : index
    %11 = vector.load %arg5[%c0_9, %c0_10] : memref<1x128xf32, #tpu.memory_space<vmem>>, vector<1x128xf32>
    %12 = vector.broadcast %11 : vector<1x128xf32> to vector<16x128xf32>
    %13 = arith.addf %10, %12 : vector<16x128xf32>
    %cst_11 = arith.constant 0.000000e+00 : f32
    %14 = vector.broadcast %cst_11 : f32 to vector<16x128xf32>
    %15 = arith.maximumf %13, %14 : vector<16x128xf32>
    %16 = arith.truncf %15 : vector<16x128xf32> to vector<16x128xbf16>
    %c0_12 = arith.constant 0 : index
    %c0_13 = arith.constant 0 : index
    %17 = vector.load %arg6[%c0_12, %c0_13] : memref<128x64xbf16, #tpu.memory_space<vmem>>, vector<128x64xbf16>
    %cst_14 = arith.constant dense<0.000000e+00> : vector<16x64xf32>
    %18 = tpu.matmul %16, %17, %cst_14 {dimension_numbers = #tpu.dot_dimension_numbers<[1], [0], [0], [1], [0, 0, 1, 1], [], []>} : vector<16x128xbf16>, vector<128x64xbf16>, vector<16x64xf32> -> vector<16x64xf32>
    %c0_15 = arith.constant 0 : index
    %c0_16 = arith.constant 0 : index
    %19 = vector.load %arg7[%c0_15, %c0_16] : memref<1x64xf32, #tpu.memory_space<vmem>>, vector<1x64xf32>
    %20 = vector.broadcast %19 : vector<1x64xf32> to vector<16x64xf32>
    %21 = arith.addf %18, %20 : vector<16x64xf32>
    %cst_17 = arith.constant 0.000000e+00 : f32
    %22 = vector.broadcast %cst_17 : f32 to vector<16x64xf32>
    %23 = arith.maximumf %21, %22 : vector<16x64xf32>
    %24 = arith.truncf %23 : vector<16x64xf32> to vector<16x64xbf16>
    %c0_18 = arith.constant 0 : index
    %c0_19 = arith.constant 0 : index
    %25 = vector.load %arg8[%c0_18, %c0_19] : memref<64x32xbf16, #tpu.memory_space<vmem>>, vector<64x32xbf16>
    %cst_20 = arith.constant dense<0.000000e+00> : vector<16x32xf32>
    %26 = tpu.matmul %24, %25, %cst_20 {dimension_numbers = #tpu.dot_dimension_numbers<[1], [0], [0], [1], [0, 0, 1, 1], [], []>} : vector<16x64xbf16>, vector<64x32xbf16>, vector<16x32xf32> -> vector<16x32xf32>
    %c0_21 = arith.constant 0 : index
    %c0_22 = arith.constant 0 : index
    %27 = vector.load %arg9[%c0_21, %c0_22] : memref<1x32xf32, #tpu.memory_space<vmem>>, vector<1x32xf32>
    %28 = vector.broadcast %27 : vector<1x32xf32> to vector<16x32xf32>
    %29 = arith.addf %26, %28 : vector<16x32xf32>
    %cst_23 = arith.constant 0.000000e+00 : f32
    %30 = vector.broadcast %cst_23 : f32 to vector<16x32xf32>
    %31 = arith.maximumf %29, %30 : vector<16x32xf32>
    %32 = arith.truncf %31 : vector<16x32xf32> to vector<16x32xbf16>
    %c0_24 = arith.constant 0 : index
    %c0_25 = arith.constant 0 : index
    %33 = vector.load %arg10[%c0_24, %c0_25] : memref<32x2xbf16, #tpu.memory_space<vmem>>, vector<32x2xbf16>
    %cst_26 = arith.constant dense<0.000000e+00> : vector<16x2xf32>
    %34 = tpu.matmul %32, %33, %cst_26 {dimension_numbers = #tpu.dot_dimension_numbers<[1], [0], [0], [1], [0, 0, 1, 1], [], []>} : vector<16x32xbf16>, vector<32x2xbf16>, vector<16x2xf32> -> vector<16x2xf32>
    %c0_27 = arith.constant 0 : index
    %c0_28 = arith.constant 0 : index
    %35 = vector.load %arg11[%c0_27, %c0_28] : memref<1x2xf32, #tpu.memory_space<vmem>>, vector<1x2xf32>
    %36 = vector.broadcast %35 : vector<1x2xf32> to vector<16x2xf32>
    %37 = arith.addf %34, %36 : vector<16x2xf32>
    %38 = vector.extract_strided_slice %37 {offsets = [0, 1], sizes = [16, 1], strides = [1, 1]} : vector<16x2xf32> to vector<16x1xf32>
    %39 = vector.extract_strided_slice %37 {offsets = [0, 0], sizes = [16, 1], strides = [1, 1]} : vector<16x2xf32> to vector<16x1xf32>
    %40 = arith.subf %38, %39 : vector<16x1xf32>
    %cst_29 = arith.constant 0.000000e+00 : f32
    %41 = vector.broadcast %cst_29 : f32 to vector<16x1xf32>
    %42 = arith.subf %41, %40 : vector<16x1xf32>
    %43 = math.exp %42 : vector<16x1xf32>
    %cst_30 = arith.constant 1.000000e+00 : f32
    %44 = vector.broadcast %cst_30 : f32 to vector<16x1xf32>
    %45 = arith.addf %44, %43 : vector<16x1xf32>
    %46 = tpu.reciprocal %45 {approx = true} : vector<16x1xf32> -> vector<16x1xf32>
    %cst_31 = arith.constant 1.000000e+00 : f32
    %47 = vector.broadcast %cst_31 : f32 to vector<16x1xf32>
    %48 = arith.subf %47, %46 : vector<16x1xf32>
    %49 = tpu.concatenate %48, %46, %37 in 1 : vector<16x1xf32>, vector<16x1xf32>, vector<16x2xf32> -> vector<16x4xf32>
    %c0_32 = arith.constant 0 : index
    %c0_33 = arith.constant 0 : index
    %50 = vector.load %arg12[%c0_32, %c0_33] : memref<16x4xf32, #tpu.memory_space<vmem>>, vector<16x4xf32>
    tpu.vector_store %arg12[%c0_32, %c0_33], %49 {strides = array<i32>} : memref<16x4xf32, #tpu.memory_space<vmem>>, vector<16x4xf32>,
    return
  }
  func.func @transform_0(%arg0: i32) -> (i32, i32) {
    %c0_i32 = arith.constant 0 : i32
    %c0_i32_0 = arith.constant 0 : i32
    return %arg0, %c0_i32 : i32, i32
  }
  func.func @transform_1(%arg0: i32) -> (i32, i32) {
    %c0_i32 = arith.constant 0 : i32
    %c0_i32_0 = arith.constant 0 : i32
    %c0_i32_1 = arith.constant 0 : i32
    return %c0_i32, %c0_i32_0 : i32, i32
  }
  func.func @transform_2(%arg0: i32) -> (i32, i32) {
    %c0_i32 = arith.constant 0 : i32
    %c0_i32_0 = arith.constant 0 : i32
    %c0_i32_1 = arith.constant 0 : i32
    return %c0_i32, %c0_i32_0 : i32, i32
  }
  func.func @transform_3(%arg0: i32) -> (i32, i32) {
    %c0_i32 = arith.constant 0 : i32
    %c0_i32_0 = arith.constant 0 : i32
    %c0_i32_1 = arith.constant 0 : i32
    return %c0_i32, %c0_i32_0 : i32, i32
  }
  func.func @transform_4(%arg0: i32) -> (i32, i32) {
    %c0_i32 = arith.constant 0 : i32
    %c0_i32_0 = arith.constant 0 : i32
    %c0_i32_1 = arith.constant 0 : i32
    return %c0_i32, %c0_i32_0 : i32, i32
  }
  func.func @transform_5(%arg0: i32) -> (i32, i32) {
    %c0_i32 = arith.constant 0 : i32
    %c0_i32_0 = arith.constant 0 : i32
    %c0_i32_1 = arith.constant 0 : i32
    return %c0_i32, %c0_i32_0 : i32, i32
  }
  func.func @transform_6(%arg0: i32) -> (i32, i32) {
    %c0_i32 = arith.constant 0 : i32
    %c0_i32_0 = arith.constant 0 : i32
    %c0_i32_1 = arith.constant 0 : i32
    return %c0_i32, %c0_i32_0 : i32, i32
  }
  func.func @transform_7(%arg0: i32) -> (i32, i32) {
    %c0_i32 = arith.constant 0 : i32
    %c0_i32_0 = arith.constant 0 : i32
    %c0_i32_1 = arith.constant 0 : i32
    return %c0_i32, %c0_i32_0 : i32, i32
  }
  func.func @transform_8(%arg0: i32) -> (i32, i32) {
    %c0_i32 = arith.constant 0 : i32
    %c0_i32_0 = arith.constant 0 : i32
    %c0_i32_1 = arith.constant 0 : i32
    return %c0_i32, %c0_i32_0 : i32, i32
  }
  func.func @transform_9(%arg0: i32) -> (i32, i32) {
    %c0_i32 = arith.constant 0 : i32
    %c0_i32_0 = arith.constant 0 : i32
    %c0_i32_1 = arith.constant 0 : i32
    return %c0_i32, %c0_i32_0 : i32, i32
  }
  func.func @transform_10(%arg0: i32) -> (i32, i32) {
    %c0_i32 = arith.constant 0 : i32
    %c0_i32_0 = arith.constant 0 : i32
    %c0_i32_1 = arith.constant 0 : i32
    return %c0_i32, %c0_i32_0 : i32, i32
  }
  func.func @transform_11(%arg0: i32) -> (i32, i32) {
    %c0_i32 = arith.constant 0 : i32
    %c0_i32_0 = arith.constant 0 : i32
    return %arg0, %c0_i32 : i32, i32
  }
}

</mosaic_0001>

<bundles_post_ra>
// kernel: tpu_custom_call.1
= control target key start
LH: loop header
LB: loop body
LE: loop exit
PB: predicated region body
PF: predicated region fallthrough
CT: control target
= control target key end

     0   :  { %16 = vsyncpa [#allocation3], 0  ;;  %s2075_s0 = inlined_call_operand.hbm [shape: bf16[16,768], index: 0, kind: input, shape index: {}]   ;;  %s2076_s1 = inlined_call_operand.hbm [shape: bf16[768,256], index: 1, kind: input, shape index: {}]   ;;  %s2077_s2 = inlined_call_operand.vmem [shape: f32[1,256], index: 2, kind: input, shape index: {}]   ;;  %s2078_s3 = inlined_call_operand.vmem [shape: bf16[256,128], index: 3, kind: input, shape index: {}]   ;;  %s2079_s4 = inlined_call_operand.hbm [shape: f32[1,128], index: 4, kind: input, shape index: {}]   ;;  %s2080_s5 = inlined_call_operand.vmem [shape: bf16[128,64], index: 5, kind: input, shape index: {}]   ;;  %s2081_s6 = inlined_call_operand.vmem [shape: f32[1,64], index: 6, kind: input, shape index: {}]   ;;  %s2082_s7 = inlined_call_operand.vmem [shape: bf16[64,32], index: 7, kind: input, shape index: {}]   ;;  %s2083_s8 = inlined_call_operand.vmem [shape: f32[1,32], index: 8, kind: input, shape index: {}]   ;;  %s2084_s9 = inlined_call_operand.vmem [shape: bf16[32,2], index: 9, kind: input, shape index: {}]   ;;  %s2085_s10 = inlined_call_operand.vmem [shape: f32[1,2], index: 10, kind: input, shape index: {}]   ;;  %s2086_s11 = inlined_call_operand.vmem [shape: f32[16,4], index: 11, kind: output, shape index: {}]  }
   0x1   :  { %17 = vsyncpa [#allocation5], 0  ;;  %s1839_s17 = smov [#allocation4]   ;;  %s1769_s21 = scalar_lea.hbm %s2076_s1, 12288 }
   0x2   :  { %s35_s18 = sshll.u32 %s1839_s17, 4  ;;  %p1770_p0 = scmp.ne.s32.totalorder %s2076_s1, %s1769_s21  ;;  %s36_s18 = int_to_ptr.vmem [resolvable:$true] %s35_s18 }
   0x3   :  { %p1773_p1 = scmp.lt.u32.totalorder %s1769_s21, %s2076_s1 }
   0x5   :  { %p1775_p2 = pnand %p1773_p1, %p1770_p0 }
   0x7   :  { %1778 = shalt.err (!%p1775_p2)
}
   0x8   :  { %s1779_s26 = scalar_lea.vmem %s36_s18, 12288  ;;  %p1784_p4 = scmp.lt.s32.totalorder %s36_s18, %s36_s18 }
   0x9   :  { %p1780_p3 = scmp.ne.s32.totalorder %s36_s18, %s1779_s26  ;;  %p1785_p5 = scmp.lt.s32.totalorder %s1779_s26, %s1779_s26 }
   0xb   :  { %p1786_p6 = por %p1785_p5, %p1784_p4 }
   0xd   :  { %p1787_p7 = pnand %p1786_p6, %p1780_p3 }
   0xf   :  { %1790 = shalt.err (!%p1787_p7)
}
  0x10   :  { %s1840_s27 = smov 128   ;;  %s1841_s28 = smov 8  }
  0x11   :  { %41 = dma.hbm_to_vmem [thread:$0]  %s2076_s1, 12288, %s36_s18, [#allocation5], %s1840_s27, %s1840_s27, %s1841_s28  }
  0x12   :  { %s1842_s12 = smov [#allocation2]   ;;  %s1791_s16 = scalar_lea.hbm %s2075_s0, 768 }
  0x13   :  { %s23_s13 = sshll.u32 %s1842_s12, 4  ;;  %p1792_p8 = scmp.ne.s32.totalorder %s2075_s0, %s1791_s16  ;;  %s24_s13 = int_to_ptr.vmem [resolvable:$true] %s23_s13 }
  0x14   :  { %p1795_p9 = scmp.lt.u32.totalorder %s1791_s16, %s2075_s0 }
  0x16   :  { %p1797_p10 = pnand %p1795_p9, %p1792_p8 }
  0x18   :  { %1800 = shalt.err (!%p1797_p10)
}
  0x19   :  { %s1801_s22 = scalar_lea.vmem %s24_s13, 768  ;;  %p1806_p12 = scmp.lt.s32.totalorder %s24_s13, %s24_s13 }
  0x1a   :  { %p1802_p11 = scmp.ne.s32.totalorder %s24_s13, %s1801_s22  ;;  %p1807_p13 = scmp.lt.s32.totalorder %s1801_s22, %s1801_s22 }
  0x1c   :  { %p1808_p0 = por %p1807_p13, %p1806_p12 }
  0x1e   :  { %p1809_p1 = pnand %p1808_p0, %p1802_p11 }
  0x20   :  { %1812 = shalt.err (!%p1809_p1)
}
  0x21   :  { %s1843_s1 = smov 384   ;;  %s1844_s18 = smov 24  }
  0x22   :  { %29 = dma.hbm_to_vmem [thread:$0]  %s2075_s0, 768, %s24_s13, [#allocation3], %s1843_s1, %s1843_s1, %s1844_s18  }
  0x23   :  { %s1845_s25 = smov [#allocation6]   ;;  %s1813_s29 = scalar_lea.hbm %s2079_s4, 16 }
  0x24   :  { %s52_s26 = sshll.u32 %s1845_s25, 4  ;;  %p1814_p2 = scmp.ne.s32.totalorder %s2079_s4, %s1813_s29  ;;  %s53_s26 = int_to_ptr.vmem [resolvable:$true] %s52_s26 }
  0x25   :  { %p1817_p3 = scmp.lt.u32.totalorder %s1813_s29, %s2079_s4 }
  0x27   :  { %p1819_p4 = pnand %p1817_p3, %p1814_p2 }
  0x29   :  { %1822 = shalt.err (!%p1819_p4)
}
  0x2a   :  { %s1823_s16 = scalar_lea.vmem %s53_s26, 16  ;;  %s1827_s0 = scalar_lea.vmem %s53_s26, 32 }
  0x2b   :  { %p1824_p5 = scmp.ne.s32.totalorder %s53_s26, %s1823_s16  ;;  %p1828_p6 = scmp.lt.s32.totalorder %s53_s26, %s53_s26 }
  0x2c   :  { %p1829_p7 = scmp.lt.s32.totalorder %s1827_s0, %s1823_s16 }
  0x2e   :  { %p1830_p8 = por %p1829_p7, %p1828_p6 }
  0x30   :  { %p1831_p9 = pnand %p1830_p8, %p1824_p5 }
  0x32   :  { %1834 = shalt.err (!%p1831_p9)
}
  0x33   :  { %55 = dma.hbm_to_vmem [thread:$0]  %s2079_s4, 16, %s53_s26, [#allocation5]  }
  0x34   :  { %1835 = dma.done.wait [#allocation3], 768  }
  0x35   :  { %1836 = vsyncadd [#allocation3], 4294966528 }
  0x36   :  { %1837 = dma.done.wait [#allocation5], 12304  }
  0x37   :  { %1838 = vsyncadd [#allocation5], 4294954992  ;;  %v1578_v0 = vld [vmem:[#allocation4 + $0x104] ss:$8 sps:$4 sm:$0xff]   ;;  %v1580_v1 = vld [vmem:[#allocation4 + $0x100] ss:$8 sps:$4 sm:$0xff]  }
  0x38   :  { %745 = vmatprep.subr.bf16.mxu0 %v1578_v0  ;;  %v1581_v2 = vld [vmem:[#allocation4 + $0x114] ss:$8 sps:$4 sm:$0xff]   ;;  %v1583_v3 = vld [vmem:[#allocation4 + $0x110] ss:$8 sps:$4 sm:$0xff]   ;;  %v1584_v4 = vld [vmem:[#allocation4 + $0x124] ss:$8 sps:$4 sm:$0xff]  }
  0x39   :  { %746 = vmatpush1.bf16.msra.mxu0 %v1580_v1  ;;  %v1586_v5 = vld [vmem:[#allocation4 + $0x120] ss:$8 sps:$4 sm:$0xff]   ;;  %v1587_v6 = vld [vmem:[#allocation4 + $0x134] ss:$8 sps:$4 sm:$0xff]   ;;  %v1589_v7 = vld [vmem:[#allocation4 + $0x130] ss:$8 sps:$4 sm:$0xff]  }
  0x3a   :  { %747 = vmatprep.subr.bf16.mxu0 %v1581_v2  ;;  %v1590_v8 = vld [vmem:[#allocation4 + $0x144] ss:$8 sps:$4 sm:$0xff]   ;;  %v1592_v9 = vld [vmem:[#allocation4 + $0x140] ss:$8 sps:$4 sm:$0xff]   ;;  %v1593_v10 = vld [vmem:[#allocation4 + $0x154] ss:$8 sps:$4 sm:$0xff]  }
  0x3b   :  { %v1595_v11 = vld [vmem:[#allocation4 + $0x150] ss:$8 sps:$4 sm:$0xff]   ;;  %v1596_v12 = vld [vmem:[#allocation4 + $0x164] ss:$8 sps:$4 sm:$0xff]   ;;  %v1625_v14 = vld [vmem:[#allocation4] ss:$8 sps:$4 sm:$0xff]  }
  0x3c   :  { %v1623_v13 = vld [vmem:[#allocation4 + $0x4] ss:$8 sps:$4 sm:$0xff]   ;;  %v1598_v15 = vld [vmem:[#allocation4 + $0x160] ss:$8 sps:$4 sm:$0xff]   ;;  %v1629_v16 = vld [vmem:[#allocation4 + $0x14] ss:$8 sps:$4 sm:$0xff]  }
  0x3d   :  { %748 = vmatpush1.bf16.msra.mxu0 %v1583_v3  ;;  %702 = vmatprep.subr.bf16.mxu1 %v1623_v13  ;;  %v1631_v17 = vld [vmem:[#allocation4 + $0x10] ss:$8 sps:$4 sm:$0xff]   ;;  %v1599_v18 = vld [vmem:[#allocation4 + $0x174] ss:$8 sps:$4 sm:$0xff]   ;;  %v1638_v21 = vld [vmem:[#allocation4 + $0x24] ss:$8 sps:$4 sm:$0xff]  }
  0x3e   :  { %749 = vmatprep.subr.bf16.mxu0 %v1584_v4  ;;  %703 = vmatpush1.bf16.msra.mxu1 %v1625_v14  ;;  %v1634_v19 = vld [vmem:[#allocation2 + $0xc] ss:$24 sps:$4 sm:$0xff]   ;;  %v1601_v20 = vld [vmem:[#allocation4 + $0x170] ss:$8 sps:$4 sm:$0xff]   ;;  %v1640_v22 = vld [vmem:[#allocation4 + $0x20] ss:$8 sps:$4 sm:$0xff]  }
  0x3f   :  { %704 = vmatprep.subr.bf16.mxu1 %v1629_v16  ;;  %v1602_v23 = vld [vmem:[#allocation4 + $0x184] ss:$8 sps:$4 sm:$0xff]   ;;  %777 = vmatprep.mubr.bf16.mxu0 %v1634_v19  ;;  %v1604_v24 = vld [vmem:[#allocation4 + $0x180] ss:$8 sps:$4 sm:$0xff]   ;;  %v1644_v25 = vld [vmem:[#allocation4 + $0x34] ss:$8 sps:$4 sm:$0xff]  }
  0x40   :  { %v1605_v26 = vld [vmem:[#allocation4 + $0x194] ss:$8 sps:$4 sm:$0xff]   ;;  %v1646_v27 = vld [vmem:[#allocation4 + $0x30] ss:$8 sps:$4 sm:$0xff]   ;;  %v1650_v28 = vld [vmem:[#allocation4 + $0x44] ss:$8 sps:$4 sm:$0xff]  }
  0x41   :  { %750 = vmatpush1.bf16.msra.mxu0 %v1586_v5  ;;  %v1607_v29 = vld [vmem:[#allocation4 + $0x190] ss:$8 sps:$4 sm:$0xff]   ;;  %v1608_v30 = vld [vmem:[#allocation4 + $0x1a4] ss:$8 sps:$4 sm:$0xff]   ;;  %v1652_v31 = vld [vmem:[#allocation4 + $0x40] ss:$8 sps:$4 sm:$0xff]  }
  0x42   :  { %751 = vmatprep.subr.bf16.mxu0 %v1587_v6  ;;  %705 = vmatpush1.bf16.msra.mxu1 %v1631_v17  ;;  %v1656_v32 = vld [vmem:[#allocation4 + $0x54] ss:$8 sps:$4 sm:$0xff]   ;;  %v1610_v33 = vld [vmem:[#allocation4 + $0x1a0] ss:$8 sps:$4 sm:$0xff]   ;;  %v1658_v35 = vld [vmem:[#allocation4 + $0x50] ss:$8 sps:$4 sm:$0xff]  }
  0x43   :  { %706 = vmatprep.subr.bf16.mxu1 %v1638_v21  ;;  %v1611_v34 = vld [vmem:[#allocation4 + $0x1b4] ss:$8 sps:$4 sm:$0xff]   ;;  %v1662_v36 = vld [vmem:[#allocation4 + $0x64] ss:$8 sps:$4 sm:$0xff]   ;;  %v1613_v37 = vld [vmem:[#allocation4 + $0x1b0] ss:$8 sps:$4 sm:$0xff]  }
  0x44   :  { %v1614_v38 = vld [vmem:[#allocation4 + $0x1c4] ss:$8 sps:$4 sm:$0xff]   ;;  %v1664_v39 = vld [vmem:[#allocation4 + $0x60] ss:$8 sps:$4 sm:$0xff]   ;;  %v1668_v40 = vld [vmem:[#allocation4 + $0x74] ss:$8 sps:$4 sm:$0xff]  }
  0x45   :  { %752 = vmatpush1.bf16.msra.mxu0 %v1589_v7  ;;  %v1616_v41 = vld [vmem:[#allocation4 + $0x1c0] ss:$8 sps:$4 sm:$0xff]   ;;  %v1617_v42 = vld [vmem:[#allocation4 + $0x1d4] ss:$8 sps:$4 sm:$0xff]   ;;  %v1670_v43 = vld [vmem:[#allocation4 + $0x70] ss:$8 sps:$4 sm:$0xff]  }
  0x46   :  { %753 = vmatprep.subr.bf16.mxu0 %v1590_v8  ;;  %707 = vmatpush1.bf16.msra.mxu1 %v1640_v22  ;;  %v1674_v44 = vld [vmem:[#allocation4 + $0x84] ss:$8 sps:$4 sm:$0xff]   ;;  %v1619_v45 = vld [vmem:[#allocation4 + $0x1d0] ss:$8 sps:$4 sm:$0xff]   ;;  %v1676_v47 = vld [vmem:[#allocation4 + $0x80] ss:$8 sps:$4 sm:$0xff]  }
  0x47   :  { %708 = vmatprep.subr.bf16.mxu1 %v1644_v25  ;;  %v1620_v46 = vld [vmem:[#allocation4 + $0x1e4] ss:$8 sps:$4 sm:$0xff]   ;;  %v1680_v48 = vld [vmem:[#allocation4 + $0x94] ss:$8 sps:$4 sm:$0xff]   ;;  %v1622_v49 = vld [vmem:[#allocation4 + $0x1e0] ss:$8 sps:$4 sm:$0xff]  }
  0x48   :  { %v1626_v50 = vld [vmem:[#allocation4 + $0x1f4] ss:$8 sps:$4 sm:$0xff]   ;;  %v1682_v51 = vld [vmem:[#allocation4 + $0x90] ss:$8 sps:$4 sm:$0xff]   ;;  %v1686_v52 = vld [vmem:[#allocation4 + $0xa4] ss:$8 sps:$4 sm:$0xff]  }
  0x49   :  { %754 = vmatpush1.bf16.msra.mxu0 %v1592_v9  ;;  %v1628_v53 = vld [vmem:[#allocation4 + $0x1f0] ss:$8 sps:$4 sm:$0xff]   ;;  %v1637_v54 = vld [vmem:[#allocation4 + $0x204] ss:$8 sps:$4 sm:$0xff]   ;;  %v1688_v55 = vld [vmem:[#allocation4 + $0xa0] ss:$8 sps:$4 sm:$0xff]  }
  0x4a   :  { %755 = vmatprep.subr.bf16.mxu0 %v1593_v10  ;;  %709 = vmatpush1.bf16.msra.mxu1 %v1646_v27  ;;  %v1692_v56 = vld [vmem:[#allocation4 + $0xb4] ss:$8 sps:$4 sm:$0xff]   ;;  %v1632_v57 = vld [vmem:[#allocation2 + $0x8] ss:$24 sps:$4 sm:$0xff]   ;;  %v1635_v58 = vld [vmem:[#allocation4 + $0x200] ss:$8 sps:$4 sm:$0xff]  }
  0x4b   :  { %710 = vmatprep.subr.bf16.mxu1 %v1650_v28  ;;  %v1643_v59 = vld [vmem:[#allocation4 + $0x214] ss:$8 sps:$4 sm:$0xff]   ;;  %v1694_v60 = vld [vmem:[#allocation4 + $0xb0] ss:$8 sps:$4 sm:$0xff]   ;;  %v1698_v61 = vld [vmem:[#allocation4 + $0xc4] ss:$8 sps:$4 sm:$0xff]  }
  0x4c   :  { %v1724_v62 = vld [vmem:[#allocation2 + $0x4] ss:$24 sps:$4 sm:$0xff]   ;;  %v1641_v63 = vld [vmem:[#allocation4 + $0x210] ss:$8 sps:$4 sm:$0xff]   ;;  %v1700_v1 = vld [vmem:[#allocation4 + $0xc0] ss:$8 sps:$4 sm:$0xff]  }
  0x4d   :  { %756 = vmatpush1.bf16.msra.mxu0 %v1595_v11  ;;  %v1649_v0 = vld [vmem:[#allocation4 + $0x224] ss:$8 sps:$4 sm:$0xff]   ;;  %v1704_v3 = vld [vmem:[#allocation4 + $0xd4] ss:$8 sps:$4 sm:$0xff]   ;;  %v1647_v4 = vld [vmem:[#allocation4 + $0x220] ss:$8 sps:$4 sm:$0xff]   ;;  %734 = vmatprep.mubr.bf16.mxu1 %v1724_v62 }
  0x4e   :  { %757 = vmatprep.subr.bf16.mxu0 %v1596_v12  ;;  %711 = vmatpush1.bf16.msra.mxu1 %v1652_v31  ;;  %v1730_v2 = vld [vmem:[#allocation2 + $0x14] ss:$24 sps:$4 sm:$0xff]   ;;  %v1706_v6 = vld [vmem:[#allocation4 + $0xd0] ss:$8 sps:$4 sm:$0xff]   ;;  %v1712_v10 = vld [vmem:[#allocation4 + $0xe0] ss:$8 sps:$4 sm:$0xff]  }
  0x4f   :  { %712 = vmatprep.subr.bf16.mxu1 %v1656_v32  ;;  %v1655_v5 = vld [vmem:[#allocation4 + $0x234] ss:$8 sps:$4 sm:$0xff]   ;;  %v1710_v7 = vld [vmem:[#allocation4 + $0xe4] ss:$8 sps:$4 sm:$0xff]   ;;  %v1653_v8 = vld [vmem:[#allocation4 + $0x230] ss:$8 sps:$4 sm:$0xff]  }
  0x50   :  { %v1661_v9 = vld [vmem:[#allocation4 + $0x244] ss:$8 sps:$4 sm:$0xff]   ;;  %v1716_v11 = vld [vmem:[#allocation4 + $0xf4] ss:$8 sps:$4 sm:$0xff]   ;;  %v1659_v12 = vld [vmem:[#allocation4 + $0x240] ss:$8 sps:$4 sm:$0xff]  }
  0x51   :  { %758 = vmatpush1.bf16.msra.mxu0 %v1598_v15  ;;  %v1718_v13 = vld [vmem:[#allocation4 + $0xf0] ss:$8 sps:$4 sm:$0xff]   ;;  %v1667_v14 = vld [vmem:[#allocation4 + $0x254] ss:$8 sps:$4 sm:$0xff]   ;;  %v1673_v19 = vld [vmem:[#allocation4 + $0x264] ss:$8 sps:$4 sm:$0xff]  }
  0x52   :  { %759 = vmatprep.subr.bf16.mxu0 %v1599_v18  ;;  %713 = vmatpush1.bf16.msra.mxu1 %v1658_v35  ;;  %v1731_v15 = vld [vmem:[%s2078_s3 + $0x40] sm:$0xff]   ;;  %v1671_v21 = vld [vmem:[#allocation4 + $0x260] ss:$8 sps:$4 sm:$0xff]   ;;  %v1734_v22 = vld [vmem:[%s2078_s3 + $0x8] sm:$0xff]   ;;  %vm1847_vm0 = vmmov 0   ;;  %vm1170_vm1 = vcmask 523264  }
  0x53   :  { %714 = vmatprep.subr.bf16.mxu1 %v1662_v36  ;;  %v1722_v16 = vld [vmem:[#allocation2] ss:$24 sps:$4 sm:$0xff]   ;;  %v1685_v27 = vld [vmem:[#allocation4 + $0x284] ss:$8 sps:$4 sm:$0xff]   ;;  %v1691_v31 = vld [vmem:[#allocation4 + $0x294] ss:$8 sps:$4 sm:$0xff]  }
  0x54   :  { %v1665_v17 = vld [vmem:[#allocation4 + $0x250] ss:$8 sps:$4 sm:$0xff]   ;;  %v1737_v28 = vld [vmem:[%s2078_s3 + $0x58] sm:$0xff]   ;;  %v1703_v35 = vld [vmem:[#allocation4 + $0x2b4] ss:$8 sps:$4 sm:$0xff]   ;;  %vm1241_vm2 = vcmask 261120  }
  0x55   :  { %760 = vmatpush1.bf16.msra.mxu0 %v1601_v20  ;;  %v1732_v18 = vld [vmem:[%s2078_s3] sm:$0xff]   ;;  %v1733_v20 = vld [vmem:[%s2078_s3 + $0x48] sm:$0xff]   ;;  %vm1322_vm3 = vcmask 7168   ;;  %vm1325_vm4 = vcmask 15360   ;;  %vm1328_vm5 = vcmask 31744  }
  0x56   :  { %761 = vmatprep.subr.bf16.mxu0 %v1602_v23  ;;  %715 = vmatpush1.bf16.msra.mxu1 %v1664_v39  ;;  %v1679_v23 = vld [vmem:[#allocation4 + $0x274] ss:$8 sps:$4 sm:$0xff]   ;;  %v1677_v25 = vld [vmem:[#allocation4 + $0x270] ss:$8 sps:$4 sm:$0xff]  }
  0x57   :  { %716 = vmatprep.subr.bf16.mxu1 %v1668_v40  ;;  %v1689_v32 = vld [vmem:[#allocation4 + $0x290] ss:$8 sps:$4 sm:$0xff]   ;;  %v1715_v39 = vld [vmem:[#allocation4 + $0x2d4] ss:$8 sps:$4 sm:$0xff]  }
  0x58   :  { %v1701_v36 = vld [vmem:[#allocation4 + $0x2b0] ss:$8 sps:$4 sm:$0xff]  }
  0x59   :  { %762 = vmatpush1.bf16.msra.mxu0 %v1604_v24  ;;  %v1735_v24 = vld [vmem:[%s2078_s3 + $0x50] sm:$0xff]   ;;  %v1713_v40 = vld [vmem:[#allocation4 + $0x2d0] ss:$8 sps:$4 sm:$0xff]  }
  0x5a   :  { %763 = vmatprep.subr.bf16.mxu0 %v1605_v26  ;;  %717 = vmatpush1.bf16.msra.mxu1 %v1670_v43  ;;  %v1736_v26 = vld [vmem:[%s2078_s3 + $0x10] sm:$0xff]   ;;  %v1727_v43 = vld [vmem:[#allocation4 + $0x2f4] ss:$8 sps:$4 sm:$0xff]   ;;  %v180_v62 = vld [vmem:[%s2077_s2] sm:$0x3] }
  0x5b   :  { %718 = vmatprep.subr.bf16.mxu1 %v1674_v44  ;;  %v1725_v44 = vld [vmem:[#allocation4 + $0x2f0] ss:$8 sps:$4 sm:$0xff]  }
  0x5d   :  { %764 = vmatpush1.bf16.msra.mxu0 %v1607_v29  ;;  %v1683_v29 = vld [vmem:[#allocation4 + $0x280] ss:$8 sps:$4 sm:$0xff]  }
  0x5e   :  { %765 = vmatprep.subr.bf16.mxu0 %v1608_v30  ;;  %719 = vmatpush1.bf16.msra.mxu1 %v1676_v47  ;;  %v1738_v30 = vld [vmem:[%s2078_s3 + $0x18] sm:$0xff]   ;;  %v1740_v47 = vld [vmem:[%s2078_s3 + $0x20] sm:$0xff]  }
  0x5f   :  { %720 = vmatprep.subr.bf16.mxu1 %v1680_v48  ;;  %v1741_v48 = vld [vmem:[%s2078_s3 + $0x68] sm:$0xff]  }
  0x61   :  { %766 = vmatpush1.bf16.msra.mxu0 %v1610_v33  ;;  %v1697_v33 = vld [vmem:[#allocation4 + $0x2a4] ss:$8 sps:$4 sm:$0xff]  }
  0x62   :  { %767 = vmatprep.subr.bf16.mxu0 %v1611_v34  ;;  %721 = vmatpush1.bf16.msra.mxu1 %v1682_v51  ;;  %v1695_v34 = vld [vmem:[#allocation4 + $0x2a0] ss:$8 sps:$4 sm:$0xff]  }
  0x63   :  { %722 = vmatprep.subr.bf16.mxu1 %v1686_v52  ;;  %v1744_v51 = vld [vmem:[%s2078_s3 + $0x30] sm:$0xff]   ;;  %v1745_v52 = vld [vmem:[%s2078_s3 + $0x78] sm:$0xff]  }
  0x65   :  { %768 = vmatpush1.bf16.msra.mxu0 %v1613_v37  ;;  %v1709_v37 = vld [vmem:[#allocation4 + $0x2c4] ss:$8 sps:$4 sm:$0xff]  }
  0x66   :  { %769 = vmatprep.subr.bf16.mxu0 %v1614_v38  ;;  %723 = vmatpush1.bf16.msra.mxu1 %v1688_v55  ;;  %v1707_v38 = vld [vmem:[#allocation4 + $0x2c0] ss:$8 sps:$4 sm:$0xff]  }
  0x67   :  { %724 = vmatprep.subr.bf16.mxu1 %v1692_v56 }
  0x69   :  { %770 = vmatpush1.bf16.msra.mxu0 %v1616_v41  ;;  %v1721_v41 = vld [vmem:[#allocation4 + $0x2e4] ss:$8 sps:$4 sm:$0xff]  }
  0x6a   :  { %771 = vmatprep.subr.bf16.mxu0 %v1617_v42  ;;  %725 = vmatpush1.bf16.msra.mxu1 %v1694_v60  ;;  %v1719_v42 = vld [vmem:[#allocation4 + $0x2e0] ss:$8 sps:$4 sm:$0xff]  }
  0x6b   :  { %726 = vmatprep.subr.bf16.mxu1 %v1698_v61 }
  0x6d   :  { %772 = vmatpush1.bf16.msra.mxu0 %v1619_v45  ;;  %v1728_v45 = vld [vmem:[#allocation2 + $0x10] ss:$24 sps:$4 sm:$0xff]  }
  0x6e   :  { %773 = vmatprep.subr.bf16.mxu0 %v1620_v46  ;;  %727 = vmatpush1.bf16.msra.mxu1 %v1700_v1  ;;  %v1739_v46 = vld [vmem:[%s2078_s3 + $0x60] sm:$0xff]  }
  0x6f   :  { %728 = vmatprep.subr.bf16.mxu1 %v1704_v3 }
  0x71   :  { %774 = vmatpush1.bf16.msra.mxu0 %v1622_v49  ;;  %v1742_v49 = vld [vmem:[%s2078_s3 + $0x28] sm:$0xff]  }
  0x72   :  { %775 = vmatprep.subr.bf16.mxu0 %v1626_v50  ;;  %729 = vmatpush1.bf16.msra.mxu1 %v1706_v6  ;;  %v1743_v50 = vld [vmem:[%s2078_s3 + $0x70] sm:$0xff]  }
  0x73   :  { %730 = vmatprep.subr.bf16.mxu1 %v1710_v7 }
  0x75   :  { %776 = vmatpush1.bf16.msra.mxu0 %v1628_v53  ;;  %v1746_v53 = vld [vmem:[%s2078_s3 + $0x38] sm:$0xff]  }
  0x76   :  { %788 = vmatprep.subr.bf16.mxu0 %v1637_v54  ;;  %731 = vmatpush1.bf16.msra.mxu1 %v1712_v10  ;;  %v1846_v54 = vmov 0.0  }
  0x77   :  { %732 = vmatprep.subr.bf16.mxu1 %v1716_v11 }
  0x78   :  { %778 = vmatmul.mubr.bf16.vlgmr.msra.gmra.mrb[0].mxu0 %v1632_v57 }
  0x79   :  { %789 = vmatpush1.bf16.msra.mxu0 %v1635_v58  ;;  %820 = vmatprep.mubr.bf16.mxu0 %v1730_v2 }
  0x7a   :  { %790 = vmatprep.subr.bf16.mxu0 %v1643_v59  ;;  %733 = vmatpush1.bf16.msra.mxu1 %v1718_v13  ;;  %v182_v59 = vlaneseq }
  0x7b   :  { %1475 = vmatprep.subr.bf16.mxu1 %v1731_v15 }
  0x7c   :  { %v183_v60 = vshrl.u32 %v182_v59, 7 }
  0x7d   :  { %791 = vmatpush1.bf16.msra.mxu0 %v1641_v63  ;;  %735 = vmatmul.mubr.bf16.vlgmr.msra.gmra.mrb[0].mxu1 %v1722_v16 }
  0x7e   :  { %792 = vmatprep.subr.bf16.mxu0 %v1649_v0  ;;  %1476 = vmatpush3.bf16.msra.mxu1 %v1732_v18  ;;  %v184_v61 = vsub.s32 0, %v183_v60  ;;  %v188_v63 = vsub.s32 1, %v183_v60 }
  0x7f   :  { %1477 = vmatprep.subr.bf16.mxu1 %v1733_v20  ;;  %v1747_v20 = vld [vmem:[%s2080_s5] sm:$0xff]  }
  0x80   :  { %v185_v0 = vrot.slane %v180_v62, %v184_v61  ;;  %v189_v1 = vrot.slane %v180_v62, %v188_v63 }
  0x81   :  { %793 = vmatpush1.bf16.msra.mxu0 %v1647_v4 }
  0x82   :  { %794 = vmatprep.subr.bf16.mxu0 %v1655_v5  ;;  %1478 = vmatpush3.bf16.msra.mxu1 %v1734_v22  ;;  %v1749_v22 = vld [vmem:[%s2080_s5 + $0x10] sm:$0xff]  }
  0x83   :  { %1479 = vmatprep.subr.bf16.mxu1 %v1735_v24  ;;  %v1751_v24 = vld [vmem:[%s2080_s5 + $0x20] sm:$0xff]  }
  0x85   :  { %795 = vmatpush1.bf16.msra.mxu0 %v1653_v8 }
  0x86   :  { %796 = vmatprep.subr.bf16.mxu0 %v1661_v9  ;;  %1480 = vmatpush3.bf16.msra.mxu1 %v1736_v26  ;;  %v1753_v26 = vld [vmem:[%s2080_s5 + $0x30] sm:$0xff]  }
  0x87   :  { %1481 = vmatprep.subr.bf16.mxu1 %v1737_v28  ;;  %v1755_v28 = vld [vmem:[%s2082_s7] sm:$0xff]  }
  0x89   :  { %797 = vmatpush1.bf16.msra.mxu0 %v1659_v12 }
  0x8a   :  { %798 = vmatprep.subr.bf16.mxu0 %v1667_v14  ;;  %1482 = vmatpush3.bf16.msra.mxu1 %v1738_v30 }
  0x8b   :  { %1483 = vmatprep.subr.bf16.mxu1 %v1739_v46 }
  0x8d   :  { %799 = vmatpush1.bf16.msra.mxu0 %v1665_v17 }
  0x8e   :  { %800 = vmatprep.subr.bf16.mxu0 %v1673_v19  ;;  %1484 = vmatpush3.bf16.msra.mxu1 %v1740_v47 }
  0x8f   :  { %1485 = vmatprep.subr.bf16.mxu1 %v1741_v48 }
  0x91   :  { %801 = vmatpush1.bf16.msra.mxu0 %v1671_v21  ;;  %v1748_v21 = vld [vmem:[%s2080_s5 + $0x8] sm:$0xff]  }
  0x92   :  { %802 = vmatprep.subr.bf16.mxu0 %v1679_v23  ;;  %1486 = vmatpush3.bf16.msra.mxu1 %v1742_v49  ;;  %v1750_v23 = vld [vmem:[%s2080_s5 + $0x18] sm:$0xff]  }
  0x93   :  { %1487 = vmatprep.subr.bf16.mxu1 %v1743_v50 }
  0x95   :  { %803 = vmatpush1.bf16.msra.mxu0 %v1677_v25  ;;  %v1752_v25 = vld [vmem:[%s2080_s5 + $0x28] sm:$0xff]  }
  0x96   :  { %804 = vmatprep.subr.bf16.mxu0 %v1685_v27  ;;  %1488 = vmatpush3.bf16.msra.mxu1 %v1744_v51  ;;  %v1754_v27 = vld [vmem:[%s2080_s5 + $0x38] sm:$0xff]  }
  0x97   :  { %1489 = vmatprep.subr.bf16.mxu1 %v1745_v52 }
  0x99   :  { %805 = vmatpush1.bf16.msra.mxu0 %v1683_v29  ;;  %v1756_v29 = vld [vmem:[%s2082_s7 + $0x8] sm:$0xff]  }
  0x9a   :  { %806 = vmatprep.subr.bf16.mxu0 %v1691_v31  ;;  %1490 = vmatpush3.bf16.msra.mxu1 %v1746_v53  ;;  %v1439_v31 = vld [vmem:[#allocation6] ss:$0 sm:$0xff] }
  0x9b   :  { %1514 = vmatprep.subr.bf16.mxu1 %v1846_v54 }
  0x9d   :  { %807 = vmatpush1.bf16.msra.mxu0 %v1689_v32 }
  0x9e   :  { %808 = vmatprep.subr.bf16.mxu0 %v1697_v33 }
  0xa1   :  { %809 = vmatpush1.bf16.msra.mxu0 %v1695_v34 }
  0xa2   :  { %810 = vmatprep.subr.bf16.mxu0 %v1703_v35 }
  0xa5   :  { %811 = vmatpush1.bf16.msra.mxu0 %v1701_v36 }
  0xa6   :  { %812 = vmatprep.subr.bf16.mxu0 %v1709_v37 }
  0xa9   :  { %813 = vmatpush1.bf16.msra.mxu0 %v1707_v38 }
  0xaa   :  { %814 = vmatprep.subr.bf16.mxu0 %v1715_v39 }
  0xad   :  { %815 = vmatpush1.bf16.msra.mxu0 %v1713_v40 }
  0xae   :  { %816 = vmatprep.subr.bf16.mxu0 %v1721_v41 }
  0xb1   :  { %817 = vmatpush1.bf16.msra.mxu0 %v1719_v42  ;;  %v1757_v42 = vld [vmem:[%s2082_s7 + $0x10] sm:$0xff]  }
  0xb2   :  { %818 = vmatprep.subr.bf16.mxu0 %v1727_v43  ;;  %v1758_v43 = vld [vmem:[%s2082_s7 + $0x18] sm:$0xff]  }
  0xb5   :  { %819 = vmatpush1.bf16.msra.mxu0 %v1725_v44  ;;  %v1456_v44 = vld [vmem:[%s2081_s6] ss:$0 sm:$0xff] }
  0xb6   :  { %1534 = vmatprep.subr.bf16.mxu0 %v1846_v54 }
  0xb8   :  { %821 = vmatmul.mubr.bf16.vlgmr.msra.gmra.mrb[0].mxu0 %v1728_v45 }
  0xb9   :  { %1542 = vmatprep.mubr.msk.bf16.mxu0 %vm1847_vm0, %v1846_v54  ;;  %1535 = vmatpush3.bf16.msra.mxu0 %v1755_v28 }
  0xba   :  { %1536 = vmatprep.subr.bf16.mxu0 %v1846_v54 }
  0xbd   :  { %1537 = vmatpush3.bf16.msra.mxu0 %v1756_v29 }
  0xbe   :  { %1538 = vmatprep.subr.bf16.mxu0 %v1846_v54 }
  0xc1   :  { %1539 = vmatpush3.bf16.msra.mxu0 %v1757_v42 }
  0xc2   :  { %1540 = vmatprep.subr.bf16.mxu0 %v1846_v54 }
  0xc5   :  { %1541 = vmatpush3.bf16.msra.mxu0 %v1758_v43 }
 0x150   :  { %v736_v55 = vpop.f32.mrb[0].mxu1 }
 0x151   :  { %v738_v56 = vpop.f32.mrb[1].mxu1  ;;  %v737_v2 = vadd.f32 %v736_v55, %v185_v0  ;;  %v1759_v55 = vld [vmem:[%s2084_s9] sm:$0xff]  }
 0x152   :  { %v740_v57 = vpop.f32.mrb[2].mxu1  ;;  %v739_v3 = vadd.f32 %v738_v56, %v189_v1  ;;  %v1760_v56 = vld [vmem:[%s2084_s9 + $0x8] sm:$0xff]   ;;  %s1849_s9 = smov 2  }
 0x153   :  { %v742_v58 = vpop.f32.mrb[3].mxu1  ;;  %v741_v5 = vadd.f32 %v740_v57, %v185_v0  ;;  %v1465_v57 = vld [vmem:[%s2083_s8] ss:$0 sm:$0xff]  ;;  %s1848_s8 = smov 1  }
 0x154   :  { %v743_v8 = vadd.f32 %v742_v58, %v189_v1 }
 0x18b   :  { %v822_v4 = vpop.f32.mrb[0].mxu0 }
 0x18c   :  { %v1555_v6 = vadd.f32 %v822_v4, %v737_v2  ;;  %v824_v7 = vpop.f32.mrb[1].mxu0 }
 0x18d   :  { %v1557_v9 = vadd.f32 %v824_v7, %v739_v3  ;;  %v826_v10 = vpop.f32.mrb[2].mxu0 }
 0x18e   :  { %v1559_v11 = vadd.f32 %v826_v10, %v741_v5  ;;  %v828_v12 = vpop.f32.mrb[3].mxu0  ;;  %v831_v14 = vmax.f32 %v1555_v6, 0.0 }
 0x18f   :  { %v1561_v13 = vadd.f32 %v828_v12, %v743_v8  ;;  %v832_v16 = vmax.f32 %v1557_v9, 0.0 }
 0x190   :  { %v833_v15 = vmax.f32 %v1559_v11, 0.0 }
 0x191   :  { %v834_v17 = vmax.f32 %v1561_v13, 0.0 }
 0x192   :  { %v835_v18 = vpack.c.bf16 %v833_v15, %v831_v14 }
 0x193   :  { %v836_v19 = vpack.c.bf16 %v834_v17, %v832_v16 }
 0x195   :  { %1004 = vmatprep.mubr.bf16.mxu1 %v836_v19 }
 0x196   :  { %1005 = vmatmul.mubr.bf16.vlgmr.msra.gmra.mrb[4].mxu1 %v835_v18 }
 0x197   :  { %1515 = vmatpush3.bf16.msra.mxu1 %v1747_v20  ;;  %1530 = vmatprep.mubr.msk.bf16.mxu1 %vm1847_vm0, %v1846_v54 }
 0x198   :  { %1516 = vmatprep.subr.bf16.mxu1 %v1846_v54 }
 0x19b   :  { %1517 = vmatpush3.bf16.msra.mxu1 %v1748_v21 }
 0x19c   :  { %1518 = vmatprep.subr.bf16.mxu1 %v1846_v54 }
 0x19f   :  { %1519 = vmatpush3.bf16.msra.mxu1 %v1749_v22 }
 0x1a0   :  { %1520 = vmatprep.subr.bf16.mxu1 %v1846_v54 }
 0x1a3   :  { %1521 = vmatpush3.bf16.msra.mxu1 %v1750_v23 }
 0x1a4   :  { %1522 = vmatprep.subr.bf16.mxu1 %v1846_v54 }
 0x1a7   :  { %1523 = vmatpush3.bf16.msra.mxu1 %v1751_v24 }
 0x1a8   :  { %1524 = vmatprep.subr.bf16.mxu1 %v1846_v54 }
 0x1ab   :  { %1525 = vmatpush3.bf16.msra.mxu1 %v1752_v25 }
 0x1ac   :  { %1526 = vmatprep.subr.bf16.mxu1 %v1846_v54 }
 0x1af   :  { %1527 = vmatpush3.bf16.msra.mxu1 %v1753_v26 }
 0x1b0   :  { %1528 = vmatprep.subr.bf16.mxu1 %v1846_v54 }
 0x1b3   :  { %1529 = vmatpush3.bf16.msra.mxu1 %v1754_v27 }
 0x1b4   :  { %1546 = vmatprep.subr.bf16.mxu1 %v1846_v54 }
 0x269   :  { %v1491_v30 = vpop.f32.mrb[4].mxu1 }
 0x26a   :  { %v1492_v32 = vpop.f32.mrb[5].mxu1 }
 0x26b   :  { %v1493_v33 = vadd.f32 %v1492_v32, %v1491_v30  ;;  %v1494_v34 = vpop.f32.mrb[6].mxu1 }
 0x26c   :  { %v1495_v35 = vpop.f32.mrb[7].mxu1 }
 0x26d   :  { %v1007_v36 = vadd.f32 %v1493_v33, %v1439_v31  ;;  %v1496_v37 = vadd.f32 %v1495_v35, %v1494_v34 }
 0x26f   :  { %v1010_v38 = vadd.f32 %v1496_v37, %v1439_v31  ;;  %v1013_v39 = vmax.f32 %v1007_v36, 0.0 }
 0x271   :  { %v1014_v40 = vmax.f32 %v1010_v38, 0.0 }
 0x273   :  { %v1015_v41 = vpack.c.bf16 %v1014_v40, %v1013_v39 }
 0x275   :  { %1531 = vmatmul.mubr.bf16.vlgmr.msra.gmra.mrb[8].mxu1 %v1015_v41 }
 0x276   :  { %1550 = vmatprep.mubr.msk.bf16.mxu1 %vm1847_vm0, %v1846_v54  ;;  %1547 = vmatpush3.bf16.msra.mxu1 %v1759_v55 }
 0x277   :  { %1548 = vmatprep.subr.bf16.mxu1 %v1846_v54  ;;  %v1471_v54 = vld [vmem:[%s2085_s10] ss:$0 sm:$0xff]  ;;  %s1850_s10 = smov 127  }
 0x27a   :  { %1549 = vmatpush3.bf16.msra.mxu1 %v1760_v56 }
 0x348   :  { %v1121_v45 = vpop.f32.mrb[8].mxu1 }
 0x349   :  { %v1122_v46 = vadd.f32 %v1456_v44, %v1121_v45  ;;  %v1532_v47 = vpop.f32.mrb[9].mxu1 }
 0x34a   :  { %v1124_v48 = vpop.f32.mrb[10].mxu1 }
 0x34b   :  { %v1125_v49 = vadd.f32 %v1456_v44, %v1124_v48  ;;  %v1533_v50 = vpop.f32.mrb[11].mxu1  ;;  %v1128_v51 = vmax.f32 %v1122_v46, 0.0 }
 0x34d   :  { %v1129_v52 = vmax.f32 %v1125_v49, 0.0 }
 0x34f   :  { %v1130_v53 = vpack.c.bf16 %v1129_v52, %v1128_v51 }
 0x351   :  { %1543 = vmatmul.mubr.msk.bf16.vlgmr.msra.gmra.mrb[4].mxu0 %vm1170_vm1, %v1130_v53 }
 0x424   :  { %v1208_v58 = vpop.f32.mrb[4].mxu0 }
 0x425   :  { %v1209_v59 = vadd.f32 %v1465_v57, %v1208_v58  ;;  %v1544_v60 = vpop.f32.mrb[5].mxu0 }
 0x426   :  { %v1211_v61 = vpop.f32.mrb[6].mxu0 }
 0x427   :  { %v1212_v62 = vadd.f32 %v1465_v57, %v1211_v61  ;;  %v1545_v63 = vpop.f32.mrb[7].mxu0  ;;  %v1215_v0 = vmax.f32 %v1209_v59, 0.0 }
 0x429   :  { %v1216_v1 = vmax.f32 %v1212_v62, 0.0 }
 0x42b   :  { %v1217_v2 = vpack.c.bf16 %v1216_v1, %v1215_v0 }
 0x42d   :  { %1551 = vmatmul.mubr.msk.bf16.vlgmr.msra.gmra.mrb[12].mxu1 %vm1241_vm2, %v1217_v2 }
 0x500   :  { %v1279_v3 = vpop.f32.mrb[12].mxu1 }
 0x501   :  { %v1280_v4 = vadd.f32 %v1471_v54, %v1279_v3  ;;  %v1552_v5 = vpop.f32.mrb[13].mxu1 }
 0x502   :  { %v1282_v6 = vpop.f32.mrb[14].mxu1 }
 0x503   :  { %1288 = vrot.lane.b32.xlu0 %v1280_v4, %s1848_s8  ;;  %v1553_v7 = vpop.f32.mrb[15].mxu1  ;;  %v1283_v8 = vadd.f32 %v1471_v54, %v1282_v6 }
 0x507   :  { %1290 = vrot.lane.b32.xlu0 %v1283_v8, %s1848_s8 }
 0x50b   :  { %1316 = vrot.lane.b32.xlu0 %v1280_v4, %s1849_s9 }
 0x575   :  { %v1289_v9 = vpop.permute.xlu0 %1288 }
 0x576   :  { %v1294_v10 = vsub.f32 %v1280_v4, %v1289_v9 }
 0x578   :  { %v1296_v11 = vsub.f32 0.0, %v1294_v10 }
 0x579   :  { %v1291_v12 = vpop.permute.xlu0 %1290 }
 0x57a   :  { %v1298_v13 = vmul.f32 1.442695, %v1296_v11  ;;  %v1295_v14 = vsub.f32 %v1283_v8, %v1291_v12 }
 0x57c   :  { %1761 = vpow2.f32 %v1298_v13  ;;  %v1297_v15 = vsub.f32 0.0, %v1295_v14 }
 0x57d   :  { %v1317_v26 = vpop.permute.xlu0 %1316 }
 0x57e   :  { %v1300_v16 = vmul.f32 1.442695, %v1297_v15 }
 0x580   :  { %1763 = vpow2.f32 %v1300_v16 }
 0x586   :  { %v1762_v17 = vpop.eup %1761 }
 0x587   :  { %v1302_v18 = vadd.f32 1.0, %v1762_v17 }
 0x589   :  { %1765 = vrcp.f32 %v1302_v18 }
 0x58a   :  { %v1764_v19 = vpop.eup %1763 }
 0x58b   :  { %v1303_v20 = vadd.f32 1.0, %v1764_v19 }
 0x58d   :  { %1767 = vrcp.f32 %v1303_v20 }
 0x593   :  { %v1766_v21 = vpop.eup %1765 }
 0x594   :  { %v1306_v22 = vsub.f32 1.0, %v1766_v21 }
 0x596   :  { %1310 = vrot.lane.b32.xlu1 %v1306_v22, %s1850_s10 }
 0x597   :  { %v1768_v23 = vpop.eup %1767 }
 0x598   :  { %v1307_v24 = vsub.f32 1.0, %v1768_v23 }
 0x59a   :  { %1312 = vrot.lane.b32.xlu1 %v1307_v24, %s1850_s10 }
 0x59e   :  { %1318 = vrot.lane.b32.xlu1 %v1283_v8, %s1849_s9 }
 0x608   :  { %v1311_v25 = vpop.permute.xlu1 %1310 }
 0x609   :  { %v1323_v27 = vsel %vm1322_vm3, %v1311_v25, %v1766_v21 }
 0x60a   :  { %v1326_v28 = vsel %vm1325_vm4, %v1323_v27, %v1317_v26 }
 0x60b   :  { %1329 = vst.msk [vmem:[%s2086_s11] sm:$0xff] %vm1328_vm5, %v1326_v28 }
 0x60c   :  { %v1313_v29 = vpop.permute.xlu1 %1312 }
 0x60d   :  { %v1324_v30 = vsel %vm1322_vm3, %v1313_v29, %v1768_v23 }
 0x610   :  { %v1319_v31 = vpop.permute.xlu1 %1318 }
 0x611   :  { %v1327_v32 = vsel %vm1325_vm4, %v1324_v30, %v1319_v31 }
 0x612   :  { %1330 = vst.msk [vmem:[%s2086_s11 + $0x8] sm:$0xff] %vm1328_vm5, %v1327_v32 }
 0x613   :  { %1335 = vsyncpa [#allocation3], 1 }
 0x614   :  { %1336 = vsyncpa [#allocation5], 1 }

</bundles_post_ra>
